<compile_context>
chip_gen: v7x
topology: tpu7x:2x2x1
jax: 0.10.0
libtpu: 0.0.40
codegen_flags: <defaults>
</compile_context>

<pallas_src>
import functools

import jax
import jax.numpy as jnp
from jax.experimental import pallas as pl
from jax.experimental.pallas import tpu as pltpu


# ------------------------------ fused kernel --------------------------------
def _outconv_prob_kernel(x_ref,
                         wm1_ref, bm1_ref, wm2_ref, bm2_ref,
                         wl1_ref, bl1_ref, wl2_ref, bl2_ref,
                         mu_ref, lv_ref):
    # x_ref : (1, Cin, TS)       one batch element, one spatial tile (TS % 128 == 0)
    # w*_ref: (Co_i, Ci_i)       channel-mixing matrices
    # b*_ref: (Co_i, 1)          biases (broadcast along lanes)
    # mu_ref / lv_ref: (1, Cout, TS)
    x = x_ref[0]                                                    # (Cin, TS) f32

    # mu branch: relu(W1 @ x + b1) -> W2 @ h + b2
    h_mu = jnp.dot(wm1_ref[...], x, preferred_element_type=jnp.float32)
    h_mu = jnp.maximum(h_mu + bm1_ref[...], 0.0)
    mu = jnp.dot(wm2_ref[...], h_mu, preferred_element_type=jnp.float32) + bm2_ref[...]
    mu_ref[0] = mu.astype(mu_ref.dtype)

    # logvar branch
    h_lv = jnp.dot(wl1_ref[...], x, preferred_element_type=jnp.float32)
    h_lv = jnp.maximum(h_lv + bl1_ref[...], 0.0)
    lv = jnp.dot(wl2_ref[...], h_lv, preferred_element_type=jnp.float32) + bl2_ref[...]
    lv_ref[0] = lv.astype(lv_ref.dtype)


def _pick_tile(s_pad):
    # s_pad is a multiple of 128; pick the largest tile <= 1024 that divides it
    for ts in (1024, 512, 256, 128):
        if s_pad % ts == 0:
            return ts
    return s_pad


# ------------------------------ wrapper --------------------------------------
@jax.jit
def outconv_prob3d(x, wm1, bm1, wm2, bm2, wl1, bl1, wl2, bl2):
    # x: (N, Cin, D, H, W) f32
    N, Cin, D, Hh, Ww = x.shape
    Cmid = wm1.shape[0]
    Cout = wm2.shape[0]
    S = D * Hh * Ww

    xf = x.reshape(N, Cin, S)                     # contiguous reshape, no transpose
    # Pad spatial axis up to a multiple of 128 so every tile is lane-dense.
    S_pad = max(128, ((S + 127) // 128) * 128)
    if S_pad != S:
        xf = jnp.pad(xf, ((0, 0), (0, 0), (0, S_pad - S)))
    TS = _pick_tile(S_pad)
    grid = (N, S_pad // TS)

    # Biases as (C, 1) so they broadcast along the lane (spatial) axis.
    bm1c = bm1.reshape(Cmid, 1)
    bm2c = bm2.reshape(Cout, 1)
    bl1c = bl1.reshape(Cmid, 1)
    bl2c = bl2.reshape(Cout, 1)

    x_spec = pl.BlockSpec((1, Cin, TS), lambda n, s: (n, 0, s))
    out_spec = pl.BlockSpec((1, Cout, TS), lambda n, s: (n, 0, s))
    w1_spec = pl.BlockSpec((Cmid, Cin), lambda n, s: (0, 0))
    b1_spec = pl.BlockSpec((Cmid, 1), lambda n, s: (0, 0))
    w2_spec = pl.BlockSpec((Cout, Cmid), lambda n, s: (0, 0))
    b2_spec = pl.BlockSpec((Cout, 1), lambda n, s: (0, 0))

    mu, lv = pl.pallas_call(
        _outconv_prob_kernel,
        out_shape=(jax.ShapeDtypeStruct((N, Cout, S_pad), jnp.float32),
                   jax.ShapeDtypeStruct((N, Cout, S_pad), jnp.float32)),
        grid=grid,
        in_specs=[x_spec,
                  w1_spec, b1_spec, w2_spec, b2_spec,
                  w1_spec, b1_spec, w2_spec, b2_spec],
        out_specs=(out_spec, out_spec),
        compiler_params=pltpu.CompilerParams(
            dimension_semantics=("parallel", "parallel")),
    )(xf, wm1, bm1c, wm2, bm2c, wl1, bl1c, wl2, bl2c)

    mu = mu[:, :, :S].reshape(N, Cout, D, Hh, Ww)
    lv = lv[:, :, :S].reshape(N, Cout, D, Hh, Ww)
    return mu, lv


# --------------------------- pure-JAX reference ------------------------------
def _ref_outconv_prob3d(x, wm1, bm1, wm2, bm2, wl1, bl1, wl2, bl2):
    def conv1x1(z, w, b):
        # z: (N, Ci, D, H, W), w: (Co, Ci), b: (Co,)
        return (jnp.einsum('oc,ncdhw->nodhw', w, z)
                + b[None, :, None, None, None])

    h = jnp.maximum(conv1x1(x, wm1, bm1), 0.0)
    mu = conv1x1(h, wm2, bm2)
    h = jnp.maximum(conv1x1(x, wl1, bl1), 0.0)
    lv = conv1x1(h, wl2, bl2)
    return mu, lv


if __name__ == "__main__":
    import numpy as np

    # OutConvProb3D(in_channels=4, inter_channels=8, out_channels=4)
    N, Cin, Cmid, Cout = 2, 4, 8, 4
    D, Hh, Ww = 8, 16, 16                      # S = 2048 (lane-dense, multiple of 128)

    key = jax.random.PRNGKey(0)
    ks = jax.random.split(key, 9)
    x = jax.random.normal(ks[0], (N, Cin, D, Hh, Ww), jnp.float32)
    wm1 = jax.random.normal(ks[1], (Cmid, Cin), jnp.float32) * 0.2
    bm1 = jax.random.normal(ks[2], (Cmid,), jnp.float32) * 0.1
    wm2 = jax.random.normal(ks[3], (Cout, Cmid), jnp.float32) * 0.2
    bm2 = jax.random.normal(ks[4], (Cout,), jnp.float32) * 0.1
    wl1 = jax.random.normal(ks[5], (Cmid, Cin), jnp.float32) * 0.2
    bl1 = jax.random.normal(ks[6], (Cmid,), jnp.float32) * 0.1
    wl2 = jax.random.normal(ks[7], (Cout, Cmid), jnp.float32) * 0.2
    bl2 = jax.random.normal(ks[8], (Cout,), jnp.float32) * 0.1

    mu, lv = outconv_prob3d(x, wm1, bm1, wm2, bm2, wl1, bl1, wl2, bl2)
    mu = jax.block_until_ready(mu)
    lv = jax.block_until_ready(lv)

    mu_ref, lv_ref = _ref_outconv_prob3d(x, wm1, bm1, wm2, bm2, wl1, bl1, wl2, bl2)
    mu_ref = jax.block_until_ready(mu_ref)
    lv_ref = jax.block_until_ready(lv_ref)

    assert mu.shape == (N, Cout, D, Hh, Ww) and lv.shape == (N, Cout, D, Hh, Ww)
    np.testing.assert_allclose(np.asarray(mu), np.asarray(mu_ref), rtol=1e-4, atol=1e-4)
    np.testing.assert_allclose(np.asarray(lv), np.asarray(lv_ref), rtol=1e-4, atol=1e-4)
    print("KERNEL_OK")
</pallas_src>

<mosaic_0001>
module attributes {stable_mosaic.version = 11 : i64} {
  func.func @_outconv_prob_kernel(%arg0: i32, %arg1: i32, %arg2: memref<1x4x1024xf32, #tpu.memory_space<vmem>>, %arg3: memref<8x4xf32, #tpu.memory_space<vmem>>, %arg4: memref<8x1xf32, #tpu.memory_space<vmem>>, %arg5: memref<4x8xf32, #tpu.memory_space<vmem>>, %arg6: memref<4x1xf32, #tpu.memory_space<vmem>>, %arg7: memref<8x4xf32, #tpu.memory_space<vmem>>, %arg8: memref<8x1xf32, #tpu.memory_space<vmem>>, %arg9: memref<4x8xf32, #tpu.memory_space<vmem>>, %arg10: memref<4x1xf32, #tpu.memory_space<vmem>>, %arg11: memref<1x4x1024xf32, #tpu.memory_space<vmem>>, %arg12: memref<1x4x1024xf32, #tpu.memory_space<vmem>>) attributes {dimension_semantics = [#tpu.dimension_semantics<parallel>, #tpu.dimension_semantics<parallel>], iteration_bounds = array<i64: 2, 2>, scalar_prefetch = 0 : i64, scratch_operands = 0 : i64, tpu.core_type = #tpu.core_type<tc>, window_params = [{transform_indices = @transform_0, window_bounds = array<i64: 1, 4, 1024>}, {pipeline_mode = #tpu.pipeline_mode<synchronous>, transform_indices = @transform_1, window_bounds = array<i64: 8, 4>}, {pipeline_mode = #tpu.pipeline_mode<synchronous>, transform_indices = @transform_2, window_bounds = array<i64: 8, 1>}, {pipeline_mode = #tpu.pipeline_mode<synchronous>, transform_indices = @transform_3, window_bounds = array<i64: 4, 8>}, {pipeline_mode = #tpu.pipeline_mode<synchronous>, transform_indices = @transform_4, window_bounds = array<i64: 4, 1>}, {pipeline_mode = #tpu.pipeline_mode<synchronous>, transform_indices = @transform_5, window_bounds = array<i64: 8, 4>}, {pipeline_mode = #tpu.pipeline_mode<synchronous>, transform_indices = @transform_6, window_bounds = array<i64: 8, 1>}, {pipeline_mode = #tpu.pipeline_mode<synchronous>, transform_indices = @transform_7, window_bounds = array<i64: 4, 8>}, {pipeline_mode = #tpu.pipeline_mode<synchronous>, transform_indices = @transform_8, window_bounds = array<i64: 4, 1>}, {transform_indices = @transform_9, window_bounds = array<i64: 1, 4, 1024>}, {transform_indices = @transform_10, window_bounds = array<i64: 1, 4, 1024>}]} {
    %c0 = arith.constant 0 : index
    %c0_0 = arith.constant 0 : index
    %c0_1 = arith.constant 0 : index
    %0 = vector.load %arg2[%c0, %c0_0, %c0_1] : memref<1x4x1024xf32, #tpu.memory_space<vmem>>, vector<1x4x1024xf32>
    %1 = vector.shape_cast %0 : vector<1x4x1024xf32> to vector<4x1024xf32>
    %c0_2 = arith.constant 0 : index
    %c0_3 = arith.constant 0 : index
    %2 = vector.load %arg3[%c0_2, %c0_3] : memref<8x4xf32, #tpu.memory_space<vmem>>, vector<8x4xf32>
    %cst = arith.constant dense<0.000000e+00> : vector<8x1024xf32>
    %3 = tpu.matmul %2, %1, %cst {dimension_numbers = #tpu.dot_dimension_numbers<[1], [0], [0], [1], [0, 0, 1, 1], [], []>} : vector<8x4xf32>, vector<4x1024xf32>, vector<8x1024xf32> -> vector<8x1024xf32>
    %c0_4 = arith.constant 0 : index
    %c0_5 = arith.constant 0 : index
    %4 = vector.load %arg4[%c0_4, %c0_5] : memref<8x1xf32, #tpu.memory_space<vmem>>, vector<8x1xf32>
    %5 = vector.broadcast %4 : vector<8x1xf32> to vector<8x1024xf32>
    %6 = arith.addf %3, %5 : vector<8x1024xf32>
    %cst_6 = arith.constant 0.000000e+00 : f32
    %7 = vector.broadcast %cst_6 : f32 to vector<8x1024xf32>
    %8 = arith.maximumf %6, %7 : vector<8x1024xf32>
    %c0_7 = arith.constant 0 : index
    %c0_8 = arith.constant 0 : index
    %9 = vector.load %arg5[%c0_7, %c0_8] : memref<4x8xf32, #tpu.memory_space<vmem>>, vector<4x8xf32>
    %cst_9 = arith.constant dense<0.000000e+00> : vector<4x1024xf32>
    %10 = tpu.matmul %9, %8, %cst_9 {dimension_numbers = #tpu.dot_dimension_numbers<[1], [0], [0], [1], [0, 0, 1, 1], [], []>} : vector<4x8xf32>, vector<8x1024xf32>, vector<4x1024xf32> -> vector<4x1024xf32>
    %c0_10 = arith.constant 0 : index
    %c0_11 = arith.constant 0 : index
    %11 = vector.load %arg6[%c0_10, %c0_11] : memref<4x1xf32, #tpu.memory_space<vmem>>, vector<4x1xf32>
    %12 = vector.broadcast %11 : vector<4x1xf32> to vector<4x1024xf32>
    %13 = arith.addf %10, %12 : vector<4x1024xf32>
    %c0_12 = arith.constant 0 : index
    %c0_13 = arith.constant 0 : index
    %c0_14 = arith.constant 0 : index
    %14 = vector.load %arg11[%c0_12, %c0_13, %c0_14] : memref<1x4x1024xf32, #tpu.memory_space<vmem>>, vector<1x4x1024xf32>
    %15 = vector.shape_cast %14 : vector<1x4x1024xf32> to vector<4x1024xf32>
    %16 = vector.shape_cast %13 : vector<4x1024xf32> to vector<1x4x1024xf32>
    tpu.vector_store %arg11[%c0_12, %c0_13, %c0_14], %16 {strides = array<i32>} : memref<1x4x1024xf32, #tpu.memory_space<vmem>>, vector<1x4x1024xf32>,
    %c0_15 = arith.constant 0 : index
    %c0_16 = arith.constant 0 : index
    %17 = vector.load %arg7[%c0_15, %c0_16] : memref<8x4xf32, #tpu.memory_space<vmem>>, vector<8x4xf32>
    %cst_17 = arith.constant dense<0.000000e+00> : vector<8x1024xf32>
    %18 = tpu.matmul %17, %1, %cst_17 {dimension_numbers = #tpu.dot_dimension_numbers<[1], [0], [0], [1], [0, 0, 1, 1], [], []>} : vector<8x4xf32>, vector<4x1024xf32>, vector<8x1024xf32> -> vector<8x1024xf32>
    %c0_18 = arith.constant 0 : index
    %c0_19 = arith.constant 0 : index
    %19 = vector.load %arg8[%c0_18, %c0_19] : memref<8x1xf32, #tpu.memory_space<vmem>>, vector<8x1xf32>
    %20 = vector.broadcast %19 : vector<8x1xf32> to vector<8x1024xf32>
    %21 = arith.addf %18, %20 : vector<8x1024xf32>
    %cst_20 = arith.constant 0.000000e+00 : f32
    %22 = vector.broadcast %cst_20 : f32 to vector<8x1024xf32>
    %23 = arith.maximumf %21, %22 : vector<8x1024xf32>
    %c0_21 = arith.constant 0 : index
    %c0_22 = arith.constant 0 : index
    %24 = vector.load %arg9[%c0_21, %c0_22] : memref<4x8xf32, #tpu.memory_space<vmem>>, vector<4x8xf32>
    %cst_23 = arith.constant dense<0.000000e+00> : vector<4x1024xf32>
    %25 = tpu.matmul %24, %23, %cst_23 {dimension_numbers = #tpu.dot_dimension_numbers<[1], [0], [0], [1], [0, 0, 1, 1], [], []>} : vector<4x8xf32>, vector<8x1024xf32>, vector<4x1024xf32> -> vector<4x1024xf32>
    %c0_24 = arith.constant 0 : index
    %c0_25 = arith.constant 0 : index
    %26 = vector.load %arg10[%c0_24, %c0_25] : memref<4x1xf32, #tpu.memory_space<vmem>>, vector<4x1xf32>
    %27 = vector.broadcast %26 : vector<4x1xf32> to vector<4x1024xf32>
    %28 = arith.addf %25, %27 : vector<4x1024xf32>
    %c0_26 = arith.constant 0 : index
    %c0_27 = arith.constant 0 : index
    %c0_28 = arith.constant 0 : index
    %29 = vector.load %arg12[%c0_26, %c0_27, %c0_28] : memref<1x4x1024xf32, #tpu.memory_space<vmem>>, vector<1x4x1024xf32>
    %30 = vector.shape_cast %29 : vector<1x4x1024xf32> to vector<4x1024xf32>
    %31 = vector.shape_cast %28 : vector<4x1024xf32> to vector<1x4x1024xf32>
    tpu.vector_store %arg12[%c0_26, %c0_27, %c0_28], %31 {strides = array<i32>} : memref<1x4x1024xf32, #tpu.memory_space<vmem>>, vector<1x4x1024xf32>,
    return
  }
  func.func @transform_0(%arg0: i32, %arg1: i32) -> (i32, i32, i32) {
    %c0_i32 = arith.constant 0 : i32
    %c0_i32_0 = arith.constant 0 : i32
    return %arg0, %c0_i32, %arg1 : i32, i32, i32
  }
  func.func @transform_1(%arg0: i32, %arg1: i32) -> (i32, i32) {
    %c0_i32 = arith.constant 0 : i32
    %c0_i32_0 = arith.constant 0 : i32
    %c0_i32_1 = arith.constant 0 : i32
    return %c0_i32, %c0_i32_0 : i32, i32
  }
  func.func @transform_2(%arg0: i32, %arg1: i32) -> (i32, i32) {
    %c0_i32 = arith.constant 0 : i32
    %c0_i32_0 = arith.constant 0 : i32
    %c0_i32_1 = arith.constant 0 : i32
    return %c0_i32, %c0_i32_0 : i32, i32
  }
  func.func @transform_3(%arg0: i32, %arg1: i32) -> (i32, i32) {
    %c0_i32 = arith.constant 0 : i32
    %c0_i32_0 = arith.constant 0 : i32
    %c0_i32_1 = arith.constant 0 : i32
    return %c0_i32, %c0_i32_0 : i32, i32
  }
  func.func @transform_4(%arg0: i32, %arg1: i32) -> (i32, i32) {
    %c0_i32 = arith.constant 0 : i32
    %c0_i32_0 = arith.constant 0 : i32
    %c0_i32_1 = arith.constant 0 : i32
    return %c0_i32, %c0_i32_0 : i32, i32
  }
  func.func @transform_5(%arg0: i32, %arg1: i32) -> (i32, i32) {
    %c0_i32 = arith.constant 0 : i32
    %c0_i32_0 = arith.constant 0 : i32
    %c0_i32_1 = arith.constant 0 : i32
    return %c0_i32, %c0_i32_0 : i32, i32
  }
  func.func @transform_6(%arg0: i32, %arg1: i32) -> (i32, i32) {
    %c0_i32 = arith.constant 0 : i32
    %c0_i32_0 = arith.constant 0 : i32
    %c0_i32_1 = arith.constant 0 : i32
    return %c0_i32, %c0_i32_0 : i32, i32
  }
  func.func @transform_7(%arg0: i32, %arg1: i32) -> (i32, i32) {
    %c0_i32 = arith.constant 0 : i32
    %c0_i32_0 = arith.constant 0 : i32
    %c0_i32_1 = arith.constant 0 : i32
    return %c0_i32, %c0_i32_0 : i32, i32
  }
  func.func @transform_8(%arg0: i32, %arg1: i32) -> (i32, i32) {
    %c0_i32 = arith.constant 0 : i32
    %c0_i32_0 = arith.constant 0 : i32
    %c0_i32_1 = arith.constant 0 : i32
    return %c0_i32, %c0_i32_0 : i32, i32
  }
  func.func @transform_9(%arg0: i32, %arg1: i32) -> (i32, i32, i32) {
    %c0_i32 = arith.constant 0 : i32
    %c0_i32_0 = arith.constant 0 : i32
    return %arg0, %c0_i32, %arg1 : i32, i32, i32
  }
  func.func @transform_10(%arg0: i32, %arg1: i32) -> (i32, i32, i32) {
    %c0_i32 = arith.constant 0 : i32
    %c0_i32_0 = arith.constant 0 : i32
    return %arg0, %c0_i32, %arg1 : i32, i32, i32
  }
}

</mosaic_0001>

<bundles_post_ra>
// kernel: outconv_prob3d.1
= control target key start
LH: loop header
LB: loop body
LE: loop exit
PB: predicated region body
PF: predicated region fallthrough
CT: control target
= control target key end

     0   :  { %s2019_s13 = smov 0   ;;  %s2021_s14 = smov 0   ;;  %s2190_s0 = inlined_call_operand.vmem [shape: f32[2,4,2048], index: 0, kind: input, shape index: {}]   ;;  %s2191_s1 = inlined_call_operand.vmem [shape: f32[8,4], index: 1, kind: input, shape index: {}]   ;;  %s2192_s2 = inlined_call_operand.vmem [shape: f32[8,1], index: 2, kind: input, shape index: {}]   ;;  %s2193_s3 = inlined_call_operand.vmem [shape: f32[4,8], index: 3, kind: input, shape index: {}]   ;;  %s2194_s4 = inlined_call_operand.vmem [shape: f32[4,1], index: 4, kind: input, shape index: {}]   ;;  %s2195_s5 = inlined_call_operand.vmem [shape: f32[8,4], index: 5, kind: input, shape index: {}]   ;;  %s2196_s6 = inlined_call_operand.vmem [shape: f32[8,1], index: 6, kind: input, shape index: {}]   ;;  %s2197_s7 = inlined_call_operand.vmem [shape: f32[4,8], index: 7, kind: input, shape index: {}]   ;;  %s2198_s8 = inlined_call_operand.vmem [shape: f32[4,1], index: 8, kind: input, shape index: {}]   ;;  %s2199_s9 = inlined_call_operand.vmem [shape: f32[2,4,2048], index: 9, kind: output, shape index: {0}]   ;;  %s2200_s10 = inlined_call_operand.vmem [shape: f32[2,4,2048], index: 10, kind: output, shape index: {1}]  }
   0x1   :  { %s2023_s15 = smov 0   ;;  %s2025_s16 = smov 0  }
   0x2   :  { %s2027_s17 = smov 0  }
   0x3 LB: > { %s30_s18 = sadd.s32 1, %s1952_s15  ;;  %s33_s19 = sadd.s32 1, %s1956_s16  ;;  %s1960_s17 = sphi %s2027_s17, %s21_s17   ;;  %s1956_s16 = sphi %s2025_s16, %s2204_s16   ;;  %s1952_s15 = sphi %s2023_s15, %s2203_s15   ;;  %s1948_s14 = sphi %s2021_s14, %s2202_s14   ;;  %s1944_s13 = sphi %s2019_s13, %s2201_s13  }
   0x4   : > { %p31_p0 = scmp.ge.s32.totalorder %s30_s18, 2  ;;  %p1830_p1 = scmp.ge.s32.totalorder %s1960_s17, 1 }
   0x5   : > { %p338_p2 = scmp.lt.s32.totalorder %s1960_s17, 5 }
   0x6   : > { %s2206_s18 = smov (%p31_p0, %s30_s18), 0  ;;  %s2208_s19 = smov (!%p31_p0, %s33_s19), %s1956_s16 }
   0x7   : > { %p339_p3 = pnand %p1830_p1, %p338_p2  ;;  %p35_p4 = scmp.ge.s32.totalorder %s2208_s19, 2 }
   0x8   : > { %s1831_s20 = sshll.u32 (!%p339_p3), %s1944_s13, 3  ;;  %p394_p5 = scmp.lt.s32.totalorder (!%p339_p3), %s1948_s14, 1  ;;  %v1962_v0 = vmov (!%p339_p3), 0.0   ;;  %v428_v1 = vld [vmem:[%s2192_s2] sm:$0xff] (!%p339_p3)  ;;  %v1963_v2 = vmov (!%p339_p3), 0   ;;  %vm446_vm0 = vcmask (!%p339_p3), 1043456  }
   0x9   : > { %s2210_s19 = smov (%p35_p4, %s2208_s19), 0  ;;  %342 = sbr.rel (%p339_p3) target bundleno = 694 (0x2b6), region = 56 }
   0xa   : > { %p396_p6 = scmp.lt.s32.totalorder (!%p339_p3), %s1831_s20, 15  ;;  %527 = vmatprep.mubr.f32.mxu0 (!%p339_p3), %v1962_v0  ;;  %598 = vmatprep.mubr.f32.mxu1 (!%p339_p3), %v1962_v0  ;;  %v1071_v3 = vld [vmem:[%s2196_s6] sm:$0xff] (!%p339_p3)  ;;  %vm442_vm1 = vcmask (!%p339_p3), 31744   ;;  %vm762_vm2 = vcmask (!%p339_p3), 64512  }
   0xb   : > { %1916 = vset.pattern.permute.xlu0 (!%p339_p3), %v1963_v2  ;;  %1917 = vset.pattern.permute.xlu1 (!%p339_p3), %v1963_v2  ;;  %v427_v10 = vld [vmem:[%s2191_s1] sm:$0xff] (!%p339_p3) }
   0xc   : > { %431 = vperm.xlu0 (!%p339_p3), %1916, %v428_v1   ;;  %v756_v13 = vld [vmem:[%s2194_s4] sm:$0xf] (!%p339_p3) }
   0xd   : > { %759 = vperm.xlu1 (!%p339_p3), %1917, %v756_v13   ;;  %v755_v33 = vld [vmem:[%s2193_s3] sm:$0xf] (!%p339_p3) }
   0xe   : > { %v1070_v40 = vld [vmem:[%s2195_s5] sm:$0xff] (!%p339_p3) }
   0xf   : > { %v1373_v41 = vld [vmem:[%s2198_s8] sm:$0xf] (!%p339_p3) }
  0x10   : > { %s2212_s14 = smov (!%p394_p5, %s1948_s14), 1  ;;  %s2214_s20 = smov (!%p396_p6, %s1831_s20), 15  ;;  %1074 = vperm.xlu0 %1916, %v1071_v3  }
  0x11   : > { %s1832_s23 = sshll.u32 %s2212_s14, 4  ;;  %1376 = vperm.xlu1 %1917, %v1373_v41  }
  0x12   : > { %s399_s26 = sadd.s32 %s1832_s23, %s2214_s20 }
  0x13   : > { %s2057_s27 = sshll.u32 %s399_s26, 2 }
  0x14   : > { %s401_s30 = scalar_lea.vmem %s2190_s0, %s2057_s27  ;;  %s411_s29 = scalar_lea.vmem %s2199_s9, %s2057_s27 }
  0x15   : > { %v2063_v4 = vld [vmem:[%s401_s30] sm:$0xff]  ;;  %v2065_v5 = vld [vmem:[%s401_s30 + $0x8] sm:$0xff]  ;;  %v2067_v6 = vld [vmem:[%s401_s30 + $0x10] sm:$0xff]  ;;  %s421_s14 = scalar_lea.vmem %s2200_s10, %s2057_s27 }
  0x16   : > { %v2071_v7 = vcombine.high %v2063_v4, %v2063_v4  ;;  %v2075_v8 = vcombine.high %v2065_v5, %v2065_v5  ;;  %v2077_v9 = vld [vmem:[%s401_s30 + $0x18] sm:$0xff]  ;;  %v2084_v11 = vcombine.high %v2067_v6, %v2067_v6 }
  0x17   : > { %v2088_v12 = vcombine.high %v2077_v9, %v2077_v9 }
  0x18   : > { %1840 = vmatprep.subr.msk.mxu0 %vm446_vm0, %v2071_v7  ;;  %1843 = vmatprep.subr.msk.mxu1 %vm446_vm0, %v2075_v8 }
  0x19   : > { %1841 = vmatpush1.msk.msra.mxu0 %vm446_vm0, %v2063_v4  ;;  %1844 = vmatpush1.msk.msra.mxu1 %vm446_vm0, %v2065_v5 }
  0x1a   : > { %1842 = vmatmul.mubr.msk.f32.vlgmr.msra.gmra.mrb[0].mxu0 %vm442_vm1, %v427_v10  ;;  %1845 = vmatmul.mubr.msk.f32.vlgmr.msra.gmra.mrb[0].mxu1 %vm442_vm1, %v427_v10 }
  0x1b   : > { %1846 = vmatprep.subr.msk.mxu0 %vm446_vm0, %v2084_v11  ;;  %1849 = vmatprep.subr.msk.mxu1 %vm446_vm0, %v2088_v12 }
  0x1c   : > { %1847 = vmatpush1.msk.msra.mxu0 %vm446_vm0, %v2067_v6  ;;  %669 = vmatprep.mubr.f32.mxu0 %v1962_v0 }
  0x1d   : > { %1850 = vmatpush1.msk.msra.mxu1 %vm446_vm0, %v2077_v9  ;;  %740 = vmatprep.mubr.f32.mxu1 %v1962_v0 }
  0x1e   : > { %1848 = vmatmul.mubr.msk.f32.vlgmr.msra.gmra.mrb[2].mxu0 %vm442_vm1, %v427_v10  ;;  %1851 = vmatmul.mubr.msk.f32.vlgmr.msra.gmra.mrb[2].mxu1 %vm442_vm1, %v427_v10 }
  0x1f   : > { %830 = vmatprep.mubr.f32.mxu0 %v1962_v0  ;;  %901 = vmatprep.mubr.f32.mxu1 %v1962_v0 }
  0x8b   : > { %v432_v14 = vpop.permute.xlu0 %431 }
  0x8c   : > { %v760_v42 = vpop.permute.xlu1 %759 }
  0x8f   : > { %v1075_v61 = vpop.permute.xlu0 %1074 }
  0xed   : > { %v529_v15 = vpop.f32.mrb[0].mxu0  ;;  %v600_v16 = vpop.f32.mrb[0].mxu1 }
  0xee   : > { %v530_v17 = vadd.f32 %v529_v15, %v432_v14  ;;  %v601_v18 = vadd.f32 %v600_v16, %v432_v14  ;;  %v531_v19 = vpop.f32.mrb[1].mxu0  ;;  %v602_v20 = vpop.f32.mrb[1].mxu1 }
  0xef   : > { %v532_v21 = vadd.f32 %v531_v19, %v432_v14  ;;  %v603_v22 = vadd.f32 %v602_v20, %v432_v14  ;;  %v1372_v19 = vld [vmem:[%s2197_s7] sm:$0xf] }
  0xf0   : > { %v747_v27 = vmax.f32 %v530_v17, 0.0  ;;  %v749_v28 = vmax.f32 %v601_v18, 0.0 }
  0xf1   : > { %v748_v23 = vmax.f32 %v532_v21, 0.0  ;;  %v750_v24 = vmax.f32 %v603_v22, 0.0  ;;  %v671_v25 = vpop.f32.mrb[2].mxu0  ;;  %v742_v26 = vpop.f32.mrb[2].mxu1 }
  0xf2   : > { %v672_v29 = vadd.f32 %v671_v25, %v432_v14  ;;  %v743_v30 = vadd.f32 %v742_v26, %v432_v14  ;;  %v673_v31 = vpop.f32.mrb[3].mxu0  ;;  %v744_v32 = vpop.f32.mrb[3].mxu1 }
  0xf3   : > { %v674_v34 = vadd.f32 %v673_v31, %v432_v14  ;;  %v745_v35 = vadd.f32 %v744_v32, %v432_v14  ;;  %766 = vmatprep.subr.mxu0 %v748_v23  ;;  %837 = vmatprep.subr.mxu1 %v750_v24  ;;  %v1377_v26 = vpop.permute.xlu1 %1376 }
  0xf4   : > { %767 = vmatpush1.msra.mxu0 %v747_v27  ;;  %838 = vmatpush1.msra.mxu1 %v749_v28  ;;  %v751_v38 = vmax.f32 %v672_v29, 0.0  ;;  %v753_v39 = vmax.f32 %v743_v30, 0.0 }
  0xf5   : > { %v752_v36 = vmax.f32 %v674_v34, 0.0  ;;  %v754_v37 = vmax.f32 %v745_v35, 0.0  ;;  %1852 = vmatmul.mubr.msk.f32.vlgmr.msra.gmra.mrb[4].mxu0 %vm762_vm2, %v755_v33  ;;  %1853 = vmatmul.mubr.msk.f32.vlgmr.msra.gmra.mrb[4].mxu1 %vm762_vm2, %v755_v33 }
  0xf6   : > { %972 = vmatprep.mubr.f32.mxu0 %v1962_v0  ;;  %1043 = vmatprep.mubr.f32.mxu1 %v1962_v0 }
  0xf7   : > { %908 = vmatprep.subr.mxu0 %v752_v36  ;;  %979 = vmatprep.subr.mxu1 %v754_v37 }
  0xf8   : > { %909 = vmatpush1.msra.mxu0 %v751_v38  ;;  %980 = vmatpush1.msra.mxu1 %v753_v39 }
  0xf9   : > { %1854 = vmatmul.mubr.msk.f32.vlgmr.msra.gmra.mrb[6].mxu0 %vm762_vm2, %v755_v33  ;;  %1855 = vmatmul.mubr.msk.f32.vlgmr.msra.gmra.mrb[6].mxu1 %vm762_vm2, %v755_v33 }
  0xfa   : > { %1856 = vmatprep.subr.msk.mxu0 %vm446_vm0, %v2071_v7  ;;  %1859 = vmatprep.subr.msk.mxu1 %vm446_vm0, %v2075_v8 }
  0xfb   : > { %1857 = vmatpush1.msk.msra.mxu0 %vm446_vm0, %v2063_v4  ;;  %1144 = vmatprep.mubr.f32.mxu0 %v1962_v0 }
  0xfc   : > { %1860 = vmatpush1.msk.msra.mxu1 %vm446_vm0, %v2065_v5  ;;  %1215 = vmatprep.mubr.f32.mxu1 %v1962_v0 }
  0xfd   : > { %1858 = vmatmul.mubr.msk.f32.vlgmr.msra.gmra.mrb[8].mxu0 %vm442_vm1, %v1070_v40  ;;  %1861 = vmatmul.mubr.msk.f32.vlgmr.msra.gmra.mrb[8].mxu1 %vm442_vm1, %v1070_v40 }
  0xfe   : > { %1862 = vmatprep.subr.msk.mxu0 %vm446_vm0, %v2084_v11  ;;  %1865 = vmatprep.subr.msk.mxu1 %vm446_vm0, %v2088_v12 }
  0xff   : > { %1863 = vmatpush1.msk.msra.mxu0 %vm446_vm0, %v2067_v6  ;;  %1286 = vmatprep.mubr.f32.mxu0 %v1962_v0 }
 0x100   : > { %1866 = vmatpush1.msk.msra.mxu1 %vm446_vm0, %v2077_v9  ;;  %1357 = vmatprep.mubr.f32.mxu1 %v1962_v0 }
 0x101   : > { %1864 = vmatmul.mubr.msk.f32.vlgmr.msra.gmra.mrb[10].mxu0 %vm442_vm1, %v1070_v40  ;;  %1867 = vmatmul.mubr.msk.f32.vlgmr.msra.gmra.mrb[10].mxu1 %vm442_vm1, %v1070_v40 }
 0x102   : > { %1446 = vmatprep.mubr.f32.mxu0 %v1962_v0  ;;  %1517 = vmatprep.mubr.f32.mxu1 %v1962_v0 }
 0x1c8   : > { %v832_v43 = vpop.f32.mrb[4].mxu0  ;;  %v903_v44 = vpop.f32.mrb[4].mxu1 }
 0x1c9   : > { %v833_v45 = vadd.f32 %v832_v43, %v760_v42  ;;  %v904_v46 = vadd.f32 %v903_v44, %v760_v42  ;;  %v834_v47 = vpop.f32.mrb[5].mxu0  ;;  %v905_v48 = vpop.f32.mrb[5].mxu1 }
 0x1ca   : > { %v835_v49 = vadd.f32 %v834_v47, %v760_v42  ;;  %v906_v50 = vadd.f32 %v905_v48, %v760_v42 }
 0x1cc   : > { %v1058_v51 = vcombine.low %v833_v45, %v835_v49  ;;  %v1059_v52 = vcombine.low %v904_v46, %v906_v50  ;;  %v974_v53 = vpop.f32.mrb[6].mxu0  ;;  %v1045_v54 = vpop.f32.mrb[6].mxu1 }
 0x1cd   : > { %v975_v55 = vadd.f32 %v974_v53, %v760_v42  ;;  %v1046_v56 = vadd.f32 %v1045_v54, %v760_v42  ;;  %v976_v57 = vpop.f32.mrb[7].mxu0  ;;  %v1047_v58 = vpop.f32.mrb[7].mxu1 }
 0x1ce   : > { %1066 = vst [vmem:[%s411_s29] sm:$0xff] %v1058_v51  ;;  %1067 = vst [vmem:[%s411_s29 + $0x8] sm:$0xff] %v1059_v52  ;;  %v977_v59 = vadd.f32 %v976_v57, %v760_v42  ;;  %v1048_v60 = vadd.f32 %v1047_v58, %v760_v42 }
 0x1d0   : > { %v1060_v62 = vcombine.low %v975_v55, %v977_v59  ;;  %v1061_v63 = vcombine.low %v1046_v56, %v1048_v60  ;;  %v1146_v1 = vpop.f32.mrb[8].mxu0  ;;  %v1217_v2 = vpop.f32.mrb[8].mxu1 }
 0x1d1   : > { %v1147_v3 = vadd.f32 %v1146_v1, %v1075_v61  ;;  %v1218_v4 = vadd.f32 %v1217_v2, %v1075_v61  ;;  %v1148_v5 = vpop.f32.mrb[9].mxu0  ;;  %v1219_v6 = vpop.f32.mrb[9].mxu1 }
 0x1d2   : > { %1068 = vst [vmem:[%s411_s29 + $0x10] sm:$0xff] %v1060_v62  ;;  %1069 = vst [vmem:[%s411_s29 + $0x18] sm:$0xff] %v1061_v63  ;;  %v1149_v7 = vadd.f32 %v1148_v5, %v1075_v61  ;;  %v1220_v8 = vadd.f32 %v1219_v6, %v1075_v61 }
 0x1d3   : > { %v1364_v13 = vmax.f32 %v1147_v3, 0.0  ;;  %v1366_v14 = vmax.f32 %v1218_v4, 0.0 }
 0x1d4   : > { %v1365_v9 = vmax.f32 %v1149_v7, 0.0  ;;  %v1367_v10 = vmax.f32 %v1220_v8, 0.0  ;;  %v1288_v11 = vpop.f32.mrb[10].mxu0  ;;  %v1359_v12 = vpop.f32.mrb[10].mxu1 }
 0x1d5   : > { %v1289_v15 = vadd.f32 %v1288_v11, %v1075_v61  ;;  %v1360_v16 = vadd.f32 %v1359_v12, %v1075_v61  ;;  %v1290_v17 = vpop.f32.mrb[11].mxu0  ;;  %v1361_v18 = vpop.f32.mrb[11].mxu1 }
 0x1d6   : > { %v1291_v20 = vadd.f32 %v1290_v17, %v1075_v61  ;;  %v1362_v21 = vadd.f32 %v1361_v18, %v1075_v61  ;;  %1382 = vmatprep.subr.mxu0 %v1365_v9  ;;  %1453 = vmatprep.subr.mxu1 %v1367_v10 }
 0x1d7   : > { %1383 = vmatpush1.msra.mxu0 %v1364_v13  ;;  %1454 = vmatpush1.msra.mxu1 %v1366_v14  ;;  %v1368_v24 = vmax.f32 %v1289_v15, 0.0  ;;  %v1370_v25 = vmax.f32 %v1360_v16, 0.0 }
 0x1d8   : > { %v1369_v22 = vmax.f32 %v1291_v20, 0.0  ;;  %v1371_v23 = vmax.f32 %v1362_v21, 0.0  ;;  %1868 = vmatmul.mubr.msk.f32.vlgmr.msra.gmra.mrb[12].mxu0 %vm762_vm2, %v1372_v19  ;;  %1869 = vmatmul.mubr.msk.f32.vlgmr.msra.gmra.mrb[12].mxu1 %vm762_vm2, %v1372_v19 }
 0x1d9   : > { %1588 = vmatprep.mubr.f32.mxu0 %v1962_v0  ;;  %1659 = vmatprep.mubr.f32.mxu1 %v1962_v0 }
 0x1da   : > { %1524 = vmatprep.subr.mxu0 %v1369_v22  ;;  %1595 = vmatprep.subr.mxu1 %v1371_v23 }
 0x1db   : > { %1525 = vmatpush1.msra.mxu0 %v1368_v24  ;;  %1596 = vmatpush1.msra.mxu1 %v1370_v25 }
 0x1dc   : > { %1870 = vmatmul.mubr.msk.f32.vlgmr.msra.gmra.mrb[14].mxu0 %vm762_vm2, %v1372_v19  ;;  %1871 = vmatmul.mubr.msk.f32.vlgmr.msra.gmra.mrb[14].mxu1 %vm762_vm2, %v1372_v19 }
 0x2ab   : > { %v1448_v27 = vpop.f32.mrb[12].mxu0  ;;  %v1519_v28 = vpop.f32.mrb[12].mxu1 }
 0x2ac   : > { %v1449_v29 = vadd.f32 %v1448_v27, %v1377_v26  ;;  %v1450_v30 = vpop.f32.mrb[13].mxu0  ;;  %v1520_v31 = vadd.f32 %v1519_v28, %v1377_v26  ;;  %v1521_v32 = vpop.f32.mrb[13].mxu1 }
 0x2ad   : > { %v1451_v33 = vadd.f32 %v1450_v30, %v1377_v26  ;;  %v1522_v34 = vadd.f32 %v1521_v32, %v1377_v26 }
 0x2af   : > { %v1674_v0 = vcombine.low %v1449_v29, %v1451_v33  ;;  %v1675_v35 = vcombine.low %v1520_v31, %v1522_v34  ;;  %v1590_v36 = vpop.f32.mrb[14].mxu0  ;;  %v1661_v37 = vpop.f32.mrb[14].mxu1 }
 0x2b0   : > { %v1591_v38 = vadd.f32 %v1590_v36, %v1377_v26  ;;  %v1662_v39 = vadd.f32 %v1661_v37, %v1377_v26  ;;  %v1592_v40 = vpop.f32.mrb[15].mxu0  ;;  %v1663_v41 = vpop.f32.mrb[15].mxu1 }
 0x2b1   : > { %1682 = vst [vmem:[%s421_s14] sm:$0xff] %v1674_v0  ;;  %1683 = vst [vmem:[%s421_s14 + $0x8] sm:$0xff] %v1675_v35  ;;  %v1593_v42 = vadd.f32 %v1592_v40, %v1377_v26  ;;  %v1664_v43 = vadd.f32 %v1663_v41, %v1377_v26 }
 0x2b3   : > { %v1676_v44 = vcombine.low %v1591_v38, %v1593_v42  ;;  %v1677_v45 = vcombine.low %v1662_v39, %v1664_v43 }
 0x2b5   : > { %1684 = vst [vmem:[%s421_s14 + $0x10] sm:$0xff] %v1676_v44  ;;  %1685 = vst [vmem:[%s421_s14 + $0x18] sm:$0xff] %v1677_v45 }
 0x2b6 PF: > { %s21_s17 = sadd.s32 1, %s1960_s17   ;;  %s2201_s13 = smov %s1952_s15 }
 0x2b7   : > { %p18_p7 = scmp.ge.s32.totalorder %s21_s17, 6   ;;  %s2202_s14 = smov %s1956_s16 }
 0x2b8   : > { %s2203_s15 = smov %s2206_s18  ;;  %s2204_s16 = smov %s2210_s19 }
 0x2b9   :  { %20 = sbr.rel (!%p18_p7) target bundleno = 3 (0x3), region = 98 }

</bundles_post_ra>
